<compile_context>
chip_gen: v7x
topology: tpu7x:2x2x1
jax: 0.10.0
libtpu: 0.0.40
codegen_flags: <defaults>
</compile_context>

<pallas_src>
import jax
import jax.numpy as jnp
from jax.experimental import pallas as pl
from jax.experimental.pallas import tpu as pltpu


def _identity_dma_kernel(x_hbm, o_hbm, sem):
    # Single whole-array HBM -> HBM DMA. No VMEM staging, no grid loop.
    cp = pltpu.make_async_copy(x_hbm, o_hbm, sem)
    cp.start()
    cp.wait()


def identity_map_pallas(x):
    """Pallas identity as one HBM->HBM DMA: returns a tensor identical to x."""
    # Degenerate cases: nothing to copy / shapes a DMA descriptor dislikes.
    if x.size == 0 or x.ndim == 0:
        return x

    nbytes = x.size * jnp.dtype(x.dtype).itemsize

    return pl.pallas_call(
        _identity_dma_kernel,
        out_shape=jax.ShapeDtypeStruct(x.shape, x.dtype),
        in_specs=[pl.BlockSpec(memory_space=pl.ANY)],   # raw HBM ref, no auto-DMA
        out_specs=pl.BlockSpec(memory_space=pl.ANY),    # raw HBM ref, no auto-DMA
        scratch_shapes=[pltpu.SemaphoreType.DMA(())],
        cost_estimate=pl.CostEstimate(
            flops=0,
            transcendentals=0,
            bytes_accessed=2 * nbytes,  # one read + one write of the array
        ),
    )(x)


def identity_map(x, *args, **kwargs):
    """Faithful IdentityMap.forward: identity is free — no kernel, no copy."""
    return x


def identity_map_config():
    # Mirrors the PyTorch `config` property (pure metadata, no compute).
    return {"mm_projector_type": "identity"}


if __name__ == "__main__":
    key = jax.random.PRNGKey(0)

    # Small projector-like input: batch=2, seq=8, hidden=32.
    x = jax.random.normal(key, (2, 8, 32), dtype=jnp.float32)

    # Pallas single-DMA copy path (demonstration / benchmarking path).
    y_kernel = identity_map_pallas(x)
    jax.block_until_ready(y_kernel)
    assert y_kernel.shape == x.shape and y_kernel.dtype == x.dtype
    assert bool(jnp.all(y_kernel == x))

    # A second dtype to exercise the dtype-agnostic DMA path (bf16).
    xb = jax.random.normal(jax.random.PRNGKey(1), (4, 128), dtype=jnp.bfloat16)
    yb = identity_map_pallas(xb)
    jax.block_until_ready(yb)
    assert yb.shape == xb.shape and yb.dtype == xb.dtype
    assert bool(jnp.all(yb == xb))

    # The module-faithful forward (zero-cost identity) and config metadata.
    y_fast = identity_map(x, "extra_positional_arg", some_kwarg=True)
    assert y_fast is x or bool(jnp.all(y_fast == x))
    assert identity_map_config() == {"mm_projector_type": "identity"}

    print("KERNEL_OK")
</pallas_src>

<mosaic_0001>
module attributes {stable_mosaic.version = 11 : i64} {
  func.func @_identity_dma_kernel(%arg0: memref<2x8x32xf32, #tpu.memory_space<any>>, %arg1: memref<2x8x32xf32, #tpu.memory_space<any>>, %arg2: memref<!tpu.dma_semaphore, #tpu.memory_space<semaphore_mem>>) attributes {dimension_semantics = [], scalar_prefetch = 0 : i64, scratch_operands = 1 : i64, tpu.core_type = #tpu.core_type<tc>} {
    tpu.enqueue_dma source(%arg0 : memref<2x8x32xf32, #tpu.memory_space<any>>) target(%arg1 : memref<2x8x32xf32, #tpu.memory_space<any>>) target_semaphore(%arg2 : memref<!tpu.dma_semaphore, #tpu.memory_space<semaphore_mem>>)
    tpu.wait_dma2 semaphore(%arg2 : memref<!tpu.dma_semaphore, #tpu.memory_space<semaphore_mem>>) src(%arg0 : memref<2x8x32xf32, #tpu.memory_space<any>>) dst(%arg1 : memref<2x8x32xf32, #tpu.memory_space<any>>)
    return
  }
}

</mosaic_0001>

<bundles_post_ra>
// kernel: tpu_custom_call.1
= control target key start
LH: loop header
LB: loop body
LE: loop exit
PB: predicated region body
PF: predicated region fallthrough
CT: control target
= control target key end

     0   :  { %s35_s6 = smov [#allocation2]   ;;  %s36_s7 = smov [#allocation3]   ;;  %s54_s0 = inlined_call_operand.hbm [shape: f32[2,8,32], index: 0, kind: input, shape index: {}]   ;;  %s55_s1 = inlined_call_operand.hbm [shape: f32[2,8,32], index: 1, kind: output, shape index: {}]  }
   0x1   :  { %s37_s8 = smov 0  }
   0x2   :  { %18 = dma.general %s54_s0, 256, %s55_s1, %s35_s6, %s36_s7, [#allocation4], %s37_s8, 0  }
   0x3   :  { %33 = dma.done.wait [#allocation2], 256 }
   0x4   :  { %34 = vsyncadd [#allocation2], 4294967040 }
   0x5   :  { %23 = vsyncmov [#allocation2] }
   0x8   :  { %s24_s13 = vpop.sfrf %23 }
   0x9   :  { %p29_p0 = scmp.ne.s32.totalorder %s24_s13, 0 }
   0xb   :  { %28 = shalt.err (%p29_p0)  }

</bundles_post_ra>
